<compile_context>
chip_gen: v7x
topology: tpu7x:2x2x1
jax: 0.10.0
libtpu: 0.0.40
codegen_flags: <defaults>
</compile_context>

<pallas_src>
import functools
import math

import jax
import jax.numpy as jnp
import numpy as np
from jax.experimental import pallas as pl
from jax.experimental.pallas import tpu as pltpu


_VMEM_LIMIT = 32 * 1024 * 1024   # explicit: v5e default scoped VMEM is 16 MiB


# ----------------------------------------------------------------------------
# Tiling helpers
# ----------------------------------------------------------------------------
def _spatial_tiling(m, batch, cap=8192):
    """Choose (padded_m, lane_tile) for a flattened-spatial axis of length m.

    * m < 128: single full-width block (block == array dim is always legal).
    * otherwise: pad m up to a multiple of 128 (lane-dense, unmasked stores)
      and pick the largest 128-multiple divisor <= cap.  When batch == 1 the
      cap is additionally limited to padded_m // 2 so the total grid keeps at
      least 2 steps and v7x's two TensorCores both get work.
    """
    if m < 128:
        return m, m
    m_pad = ((m + 127) // 128) * 128
    if batch == 1:
        cap = max(128, min(cap, m_pad // 2))
    t = min(cap, m_pad) // 128 * 128
    while m_pad % t:
        t -= 128
    return m_pad, t


def _pad_lanes(a, m_pad):
    m = a.shape[-1]
    if m == m_pad:
        return a
    pad = [(0, 0)] * (a.ndim - 1) + [(0, m_pad - m)]
    return jnp.pad(a, pad)


# ----------------------------------------------------------------------------
# Layout glue (XLA level; the only remaining copy is one pass over the
# 3-channel input, with the bf16 cast fused into the same pass under jit).
# ----------------------------------------------------------------------------
def space_to_depth_nchw(x, k, out_dtype=None):
    """(B, C, H, W) -> (B, C*k*k, (H//k)*(W//k)); rows ordered (c, kh, kw)."""
    B, C, H, W = x.shape
    Ho, Wo = H // k, W // k
    x = x.reshape(B, C, Ho, k, Wo, k)
    x = jnp.transpose(x, (0, 1, 3, 5, 2, 4))
    x = x.reshape(B, C * k * k, Ho * Wo)
    return x if out_dtype is None else x.astype(out_dtype)


def regroup_subpixels(x1, H1, W1):
    """(B, K, H1*W1) -> (B, 4, K, (H1//2)*(W1//2)).

    Leading 4 = (r, s) position of a level-1 pixel inside its level-2 parent,
    so slice [b, 2*r+s] is the stage-1 patch matrix restricted to those
    level-1 pixels, indexed by level-2 pixel on lanes.
    """
    B, K, _ = x1.shape
    H2, W2 = H1 // 2, W1 // 2
    x = x1.reshape(B, K, H2, 2, W2, 2)
    x = jnp.transpose(x, (0, 3, 5, 1, 2, 4))          # (B, r, s, K, H2, W2)
    return x.reshape(B, 4, K, H2 * W2)


# ----------------------------------------------------------------------------
# Kernel 1: stage-1 patch conv + neck 1x1 projection (level-0 features)
#   f0 = Wn0 @ relu(W1 @ x_patches + b1) + bn0, tiled over level-1 pixels.
# ----------------------------------------------------------------------------
def _stage1_neck_kernel(x_ref, w1_ref, b1_ref, wn_ref, bn_ref, f_ref):
    h = jnp.dot(w1_ref[...], x_ref[0], preferred_element_type=jnp.float32)
    h = jnp.maximum(h + b1_ref[...], 0.0)                         # (C0, TM) f32
    f = jnp.dot(wn_ref[...], h.astype(wn_ref.dtype),
                preferred_element_type=jnp.float32) + bn_ref[...]  # (D, TM)
    f_ref[0] = f.astype(f_ref.dtype)


def stage1_neck(x1, w1_mat, b1, wn, bn, *, out_dtype=jnp.float32, tile_cap=8192):
    """x1: (B, K1, M1) patch matrix.  Returns (B, D, M1)."""
    B, K1, M = x1.shape
    C0 = w1_mat.shape[0]
    D = wn.shape[0]
    Mp, TM = _spatial_tiling(M, B, tile_cap)
    x1 = _pad_lanes(x1, Mp)
    flops = 2 * B * Mp * (K1 * C0 + C0 * D)
    bytes_accessed = int(B * K1 * Mp * 2 + (C0 * K1 + D * C0) * 2 + (C0 + D) * 4
                         + B * D * Mp * jnp.dtype(out_dtype).itemsize)
    f = pl.pallas_call(
        _stage1_neck_kernel,
        grid=(B, Mp // TM),
        out_shape=jax.ShapeDtypeStruct((B, D, Mp), out_dtype),
        in_specs=[
            pl.BlockSpec((1, K1, TM), lambda b, m: (b, 0, m)),
            pl.BlockSpec((C0, K1), lambda b, m: (0, 0)),
            pl.BlockSpec((C0, 1), lambda b, m: (0, 0)),
            pl.BlockSpec((D, C0), lambda b, m: (0, 0)),
            pl.BlockSpec((D, 1), lambda b, m: (0, 0)),
        ],
        out_specs=pl.BlockSpec((1, D, TM), lambda b, m: (b, 0, m)),
        compiler_params=pltpu.CompilerParams(
            dimension_semantics=("parallel", "parallel"),
            vmem_limit_bytes=_VMEM_LIMIT),
        cost_estimate=pl.CostEstimate(flops=flops, transcendentals=0,
                                      bytes_accessed=bytes_accessed),
    )(x1.astype(jnp.bfloat16),
      w1_mat.astype(jnp.bfloat16),
      b1.reshape(C0, 1).astype(jnp.float32),
      wn.astype(jnp.bfloat16),
      bn.reshape(D, 1).astype(jnp.float32))
    return f[..., :M] if Mp != M else f


# ----------------------------------------------------------------------------
# Kernel 2: stage-1 conv + stage-2 conv + neck 1x1 projection (level-1
# features), tiled over level-2 pixels.  The stage-1 hidden is recomputed in
# VMEM so it never round-trips HBM (no h1 write, no h1 space_to_depth).
#   h_rs = relu(W1 @ x_rs + b1)              for rs in the 2x2 sub-pixel grid
#   h2   = relu(sum_rs W2[:,:,r,s] @ h_rs + b2)
#   f1   = Wn1 @ h2 + bn1
# ----------------------------------------------------------------------------
def _fused_two_stage_kernel(x4_ref, w1_ref, b1_ref, w2_ref, b2_ref,
                            wn_ref, bn_ref, f_ref):
    acc = None
    for rs in range(4):                                    # static unroll
        h = jnp.dot(w1_ref[...], x4_ref[0, rs],
                    preferred_element_type=jnp.float32)
        h = jnp.maximum(h + b1_ref[...], 0.0)              # (C0, TM) f32
        p = jnp.dot(w2_ref[rs], h.astype(w2_ref.dtype),
                    preferred_element_type=jnp.float32)    # (C1, TM) f32
        acc = p if acc is None else acc + p
    h2 = jnp.maximum(acc + b2_ref[...], 0.0)               # (C1, TM) f32
    f = jnp.dot(wn_ref[...], h2.astype(wn_ref.dtype),
                preferred_element_type=jnp.float32) + bn_ref[...]
    f_ref[0] = f.astype(f_ref.dtype)


def fused_two_stage_neck(x4, w1_mat, b1, w2_rs, b2, wn, bn, *,
                         out_dtype=jnp.float32, tile_cap=8192):
    """x4: (B, 4, K1, M2) sub-pixel-grouped patch matrices.
    w2_rs: (4, C1, C0) with w2_rs[2*r+s] = conv2 weight tap at (kh=r, kw=s).
    Returns (B, D, M2)."""
    B, _, K1, M = x4.shape
    C0 = w1_mat.shape[0]
    C1 = w2_rs.shape[1]
    D = wn.shape[0]
    Mp, TM = _spatial_tiling(M, B, tile_cap)
    x4 = _pad_lanes(x4, Mp)
    flops = 2 * B * Mp * (4 * K1 * C0 + 4 * C0 * C1 + C1 * D)
    bytes_accessed = int(B * 4 * K1 * Mp * 2
                         + (C0 * K1 + 4 * C1 * C0 + D * C1) * 2
                         + (C0 + C1 + D) * 4
                         + B * D * Mp * jnp.dtype(out_dtype).itemsize)
    f = pl.pallas_call(
        _fused_two_stage_kernel,
        grid=(B, Mp // TM),
        out_shape=jax.ShapeDtypeStruct((B, D, Mp), out_dtype),
        in_specs=[
            pl.BlockSpec((1, 4, K1, TM), lambda b, m: (b, 0, 0, m)),
            pl.BlockSpec((C0, K1), lambda b, m: (0, 0)),
            pl.BlockSpec((C0, 1), lambda b, m: (0, 0)),
            pl.BlockSpec((4, C1, C0), lambda b, m: (0, 0, 0)),
            pl.BlockSpec((C1, 1), lambda b, m: (0, 0)),
            pl.BlockSpec((D, C1), lambda b, m: (0, 0)),
            pl.BlockSpec((D, 1), lambda b, m: (0, 0)),
        ],
        out_specs=pl.BlockSpec((1, D, TM), lambda b, m: (b, 0, m)),
        compiler_params=pltpu.CompilerParams(
            dimension_semantics=("parallel", "parallel"),
            vmem_limit_bytes=_VMEM_LIMIT),
        cost_estimate=pl.CostEstimate(flops=flops, transcendentals=0,
                                      bytes_accessed=bytes_accessed),
    )(x4.astype(jnp.bfloat16),
      w1_mat.astype(jnp.bfloat16),
      b1.reshape(C0, 1).astype(jnp.float32),
      w2_rs.astype(jnp.bfloat16),
      b2.reshape(C1, 1).astype(jnp.float32),
      wn.astype(jnp.bfloat16),
      bn.reshape(D, 1).astype(jnp.float32))
    return f[..., :M] if Mp != M else f


# ----------------------------------------------------------------------------
# Sine positional encoding (PositionEmbeddingSine, normalize=True, scale=2*pi)
# Input-independent: computed once per (H, W) and cached at the neck level.
# cos(a) = sin(a + pi/2) => one transcendental per element, HW axis tiled.
# ----------------------------------------------------------------------------
def _sine_pos_kernel(y_ref, x_ref, invt_ref, phase_ref, o_ref, *, half):
    ang_y = y_ref[...] * invt_ref[...] + phase_ref[...]      # (F, THW)
    ang_x = x_ref[...] * invt_ref[...] + phase_ref[...]      # (F, THW)
    o_ref[:half, :] = jnp.sin(ang_y)
    o_ref[half:, :] = jnp.sin(ang_x)


def sine_position_encoding(H, W, d_model, temperature=10000.0):
    """Returns pos of shape (d_model, H, W) for a single image."""
    assert d_model % 2 == 0
    F_ = d_model // 2
    eps = 1e-6
    scale = 2.0 * math.pi
    y = (jnp.arange(1, H + 1, dtype=jnp.float32) / (H + eps)) * scale
    x = (jnp.arange(1, W + 1, dtype=jnp.float32) / (W + eps)) * scale
    HW = H * W
    HWp, THW = _spatial_tiling(HW, batch=1, cap=4096)
    y_row = _pad_lanes(jnp.broadcast_to(y[:, None], (H, W)).reshape(1, HW), HWp)
    x_row = _pad_lanes(jnp.broadcast_to(x[None, :], (H, W)).reshape(1, HW), HWp)
    i = jnp.arange(F_, dtype=jnp.float32)
    inv_t = (temperature ** (-2.0 * jnp.floor(i / 2.0) / F_)).reshape(F_, 1)
    inv_t = inv_t.astype(jnp.float32)
    phase = jnp.where((jnp.arange(F_) % 2) == 1, 0.5 * math.pi, 0.0)
    phase = phase.reshape(F_, 1).astype(jnp.float32)

    kern = functools.partial(_sine_pos_kernel, half=F_)
    pos = pl.pallas_call(
        kern,
        grid=(HWp // THW,),
        out_shape=jax.ShapeDtypeStruct((d_model, HWp), jnp.float32),
        in_specs=[
            pl.BlockSpec((1, THW), lambda i: (0, i)),
            pl.BlockSpec((1, THW), lambda i: (0, i)),
            pl.BlockSpec((F_, 1), lambda i: (0, 0)),
            pl.BlockSpec((F_, 1), lambda i: (0, 0)),
        ],
        out_specs=pl.BlockSpec((d_model, THW), lambda i: (0, i)),
        compiler_params=pltpu.CompilerParams(
            dimension_semantics=("parallel",),
            vmem_limit_bytes=_VMEM_LIMIT),
    )(y_row, x_row, inv_t, phase)
    if HWp != HW:
        pos = pos[:, :HW]
    return pos.reshape(d_model, H, W)


# ----------------------------------------------------------------------------
# Jitted feature path: glue + both fused kernels in a single XLA program so
# the input space-to-depth and the f32->bf16 cast fuse into one HBM pass.
# ----------------------------------------------------------------------------
@functools.partial(jax.jit, static_argnames=("feature_dtype", "tile_cap"))
def _encode_features(x, w1_mat, b1, w2_rs, b2, wn0, bn0, wn1, bn1,
                     *, feature_dtype=jnp.float32, tile_cap=8192):
    B, _, H, W = x.shape
    assert H % 4 == 0 and W % 4 == 0, "two stride-2 patch stages need H, W % 4 == 0"
    H1, W1 = H // 2, W // 2
    H2, W2 = H1 // 2, W1 // 2
    D = wn0.shape[0]
    # one XLA pass over the 3-channel input: space-to-depth + cast to bf16
    x1 = space_to_depth_nchw(x.astype(jnp.float32), 2, jnp.bfloat16)  # (B,12,M1)
    f0 = stage1_neck(x1, w1_mat, b1, wn0, bn0,
                     out_dtype=feature_dtype, tile_cap=tile_cap)
    x4 = regroup_subpixels(x1, H1, W1)                                # (B,4,12,M2)
    f1 = fused_two_stage_neck(x4, w1_mat, b1, w2_rs, b2, wn1, bn1,
                              out_dtype=feature_dtype, tile_cap=tile_cap)
    return f0.reshape(B, D, H1, W1), f1.reshape(B, D, H2, W2)


# ----------------------------------------------------------------------------
# Trunk / Neck / ImageEncoder
# ----------------------------------------------------------------------------
class ConvTrunk:
    """2-stage patch-embed trunk (kernel = stride = 2), channel_list=[16, 32]."""

    def __init__(self, key, in_chans=3):
        self.channel_list = [16, 32]
        self.patch = 2
        k1, k2, k3, k4 = jax.random.split(key, 4)
        c0, c1 = self.channel_list
        self.w1 = 0.05 * jax.random.normal(k1, (c0, in_chans, 2, 2), jnp.float32)
        self.b1 = 0.01 * jax.random.normal(k2, (c0,), jnp.float32)
        self.w2 = 0.05 * jax.random.normal(k3, (c1, c0, 2, 2), jnp.float32)
        self.b2 = 0.01 * jax.random.normal(k4, (c1,), jnp.float32)
        # MXU-friendly flattenings of the conv weights
        self.w1_mat = self.w1.reshape(c0, -1)                     # (C0, Cin*2*2)
        self.w2_mat = self.w2.reshape(c1, -1)                     # (C1, C0*2*2) (reference)
        self.w2_rs = jnp.transpose(self.w2, (2, 3, 0, 1)).reshape(4, c1, c0)


class FpnNeck:
    """FpnNeck-style neck: per-level 1x1 conv to d_model + sine pos encoding."""
    # TODO(synk): top-down FPN path (F.interpolate + lateral add) not
    # implemented; matches the fpn_top_down_levels=[] configuration.

    def __init__(self, key, backbone_channel_list, d_model=32):
        self.backbone_channel_list = list(backbone_channel_list)
        self.d_model = d_model
        keys = jax.random.split(key, 2 * len(backbone_channel_list))
        self.ws, self.bs = [], []
        for li, c in enumerate(backbone_channel_list):
            w = 0.05 * jax.random.normal(keys[2 * li], (d_model, c, 1, 1),
                                         jnp.float32)
            b = 0.01 * jax.random.normal(keys[2 * li + 1], (d_model,),
                                         jnp.float32)
            self.ws.append(w.reshape(d_model, c))
            self.bs.append(b)
        self._pos_cache = {}

    def position_encoding(self, H, W):
        # Cached concrete array per (H, W); computed eagerly (outside jit).
        key = (H, W)
        if key not in self._pos_cache:
            self._pos_cache[key] = sine_position_encoding(H, W, self.d_model)
        return self._pos_cache[key]


class ImageEncoder:
    def __init__(self, trunk, neck, scalp=0, feature_dtype=jnp.float32):
        self.trunk = trunk
        self.neck = neck
        self.scalp = scalp
        # feature_dtype=jnp.bfloat16 halves the dominant HBM output stream if
        # the downstream consumer tolerates it (accumulation stays f32).
        self.feature_dtype = feature_dtype
        assert trunk.channel_list == neck.backbone_channel_list, (
            f"Channel dims of trunk and neck do not match. "
            f"Trunk: {trunk.channel_list}, neck: {neck.backbone_channel_list}")

    def __call__(self, sample_nchw):
        trunk, neck = self.trunk, self.neck
        B, _, H, W = sample_nchw.shape
        f0, f1 = _encode_features(sample_nchw, trunk.w1_mat, trunk.b1,
                                  trunk.w2_rs, trunk.b2,
                                  neck.ws[0], neck.bs[0],
                                  neck.ws[1], neck.bs[1],
                                  feature_dtype=self.feature_dtype)
        features = [f0, f1]
        # Positional encodings are input-independent: cached per (H, W) and
        # returned with a broadcastable leading dim of 1 (no B materialized
        # copies written to HBM every forward).
        pos = [neck.position_encoding(Hl, Wl)[None]
               for (Hl, Wl) in ((H // 2, W // 2), (H // 4, W // 4))]

        if self.scalp > 0:
            features, pos = features[:-self.scalp], pos[:-self.scalp]
        src = features[-1]
        return {"vision_features": src,
                "vision_pos_enc": pos,
                "backbone_fpn": features}


# ----------------------------------------------------------------------------
# Pure-JAX / numpy references (matching bf16 cast points) for correctness
# ----------------------------------------------------------------------------
def _bf(a):
    return a.astype(jnp.bfloat16).astype(jnp.float32)


def _ref_forward(x, trunk, neck):
    B, _, H, W = x.shape
    H1, W1 = H // 2, W // 2
    H2, W2 = H1 // 2, W1 // 2
    x1 = _bf(space_to_depth_nchw(x.astype(jnp.float32), 2))
    h1 = jnp.maximum(jnp.einsum("ck,bkm->bcm", _bf(trunk.w1_mat), x1)
                     + trunk.b1[None, :, None], 0.0)
    f0 = (jnp.einsum("dc,bcm->bdm", _bf(neck.ws[0]), _bf(h1))
          + neck.bs[0][None, :, None])
    x2 = _bf(space_to_depth_nchw(h1.reshape(B, -1, H1, W1), 2))
    h2 = jnp.maximum(jnp.einsum("ck,bkm->bcm", _bf(trunk.w2_mat), x2)
                     + trunk.b2[None, :, None], 0.0)
    f1 = (jnp.einsum("dc,bcm->bdm", _bf(neck.ws[1]), _bf(h2))
          + neck.bs[1][None, :, None])
    D = neck.d_model
    return f0.reshape(B, D, H1, W1), f1.reshape(B, D, H2, W2)


def _ref_pos(H, W, d_model, T=10000.0):
    F_ = d_model // 2
    eps = 1e-6
    y = (np.arange(1, H + 1, dtype=np.float32) / (H + eps)) * 2 * np.pi
    x = (np.arange(1, W + 1, dtype=np.float32) / (W + eps)) * 2 * np.pi
    yg = np.broadcast_to(y[:, None], (H, W))
    xg = np.broadcast_to(x[None, :], (H, W))
    i = np.arange(F_, dtype=np.float32)
    dim_t = T ** (2 * np.floor(i / 2) / F_)
    py = yg[..., None] / dim_t
    px = xg[..., None] / dim_t
    even = (np.arange(F_) % 2) == 0
    py = np.where(even, np.sin(py), np.cos(py))
    px = np.where(even, np.sin(px), np.cos(px))
    pos = np.concatenate([py, px], axis=-1)       # (H, W, 2F)
    return np.transpose(pos, (2, 0, 1))           # (d_model, H, W)


# ----------------------------------------------------------------------------
if __name__ == "__main__":
    key = jax.random.PRNGKey(0)
    k_in, k_trunk, k_neck = jax.random.split(key, 3)

    # small input consistent with the module: batch=2, 3 channels, 32x32 image
    sample = jax.random.normal(k_in, (2, 3, 32, 32), jnp.float32)

    trunk = ConvTrunk(k_trunk, in_chans=3)
    neck = FpnNeck(k_neck, backbone_channel_list=trunk.channel_list, d_model=32)
    encoder = ImageEncoder(trunk, neck, scalp=0)

    out = encoder(sample)
    jax.block_until_ready(out["vision_features"])
    for t in out["backbone_fpn"] + out["vision_pos_enc"]:
        jax.block_until_ready(t)

    # shape sanity (stride-2 patch stages -> 16x16 and 8x8 maps)
    assert out["vision_features"].shape == (2, 32, 8, 8)
    assert out["backbone_fpn"][0].shape == (2, 32, 16, 16)
    # pos enc has a broadcastable batch dim of 1 (input-independent, cached)
    assert out["vision_pos_enc"][1].shape == (1, 32, 8, 8)

    # numerical sanity against a plain-JAX reference with matching bf16 casts
    f0_ref, f1_ref = _ref_forward(sample, trunk, neck)
    np.testing.assert_allclose(
        np.asarray(out["backbone_fpn"][0], dtype=np.float32),
        np.asarray(f0_ref), rtol=5e-2, atol=5e-3)
    np.testing.assert_allclose(
        np.asarray(out["backbone_fpn"][1], dtype=np.float32),
        np.asarray(f1_ref), rtol=5e-2, atol=5e-3)
    np.testing.assert_allclose(np.asarray(out["vision_pos_enc"][0][0]),
                               _ref_pos(16, 16, 32), atol=1e-3)
    np.testing.assert_allclose(np.asarray(out["vision_pos_enc"][1][0]),
                               _ref_pos(8, 8, 32), atol=1e-3)

    print("KERNEL_OK")
</pallas_src>

<mosaic_0001>
module attributes {stable_mosaic.version = 11 : i64} {
  func.func @_fused_two_stage_kernel(%arg0: i32, %arg1: i32, %arg2: memref<1x4x12x64xbf16, #tpu.memory_space<vmem>>, %arg3: memref<16x12xbf16, #tpu.memory_space<vmem>>, %arg4: memref<16x1xf32, #tpu.memory_space<vmem>>, %arg5: memref<4x32x16xbf16, #tpu.memory_space<vmem>>, %arg6: memref<32x1xf32, #tpu.memory_space<vmem>>, %arg7: memref<32x32xbf16, #tpu.memory_space<vmem>>, %arg8: memref<32x1xf32, #tpu.memory_space<vmem>>, %arg9: memref<1x32x64xf32, #tpu.memory_space<vmem>>) attributes {dimension_semantics = [#tpu.dimension_semantics<parallel>, #tpu.dimension_semantics<parallel>], iteration_bounds = array<i64: 2, 1>, scalar_prefetch = 0 : i64, scratch_operands = 0 : i64, tpu.core_type = #tpu.core_type<tc>, window_params = [{transform_indices = @transform_0, window_bounds = array<i64: 1, 4, 12, 64>}, {pipeline_mode = #tpu.pipeline_mode<synchronous>, transform_indices = @transform_1, window_bounds = array<i64: 16, 12>}, {pipeline_mode = #tpu.pipeline_mode<synchronous>, transform_indices = @transform_2, window_bounds = array<i64: 16, 1>}, {pipeline_mode = #tpu.pipeline_mode<synchronous>, transform_indices = @transform_3, window_bounds = array<i64: 4, 32, 16>}, {pipeline_mode = #tpu.pipeline_mode<synchronous>, transform_indices = @transform_4, window_bounds = array<i64: 32, 1>}, {pipeline_mode = #tpu.pipeline_mode<synchronous>, transform_indices = @transform_5, window_bounds = array<i64: 32, 32>}, {pipeline_mode = #tpu.pipeline_mode<synchronous>, transform_indices = @transform_6, window_bounds = array<i64: 32, 1>}, {transform_indices = @transform_7, window_bounds = array<i64: 1, 32, 64>}]} {
    %c0 = arith.constant 0 : index
    %c0_0 = arith.constant 0 : index
    %0 = vector.load %arg3[%c0, %c0_0] : memref<16x12xbf16, #tpu.memory_space<vmem>>, vector<16x12xbf16>
    %c0_1 = arith.constant 0 : index
    %c0_2 = arith.constant 0 : index
    %c0_3 = arith.constant 0 : index
    %c0_4 = arith.constant 0 : index
    %1 = vector.load %arg2[%c0_1, %c0_2, %c0_3, %c0_4] : memref<1x4x12x64xbf16, #tpu.memory_space<vmem>>, vector<1x1x12x64xbf16>
    %2 = vector.shape_cast %1 : vector<1x1x12x64xbf16> to vector<12x64xbf16>
    %cst = arith.constant dense<0.000000e+00> : vector<16x64xf32>
    %3 = tpu.matmul %0, %2, %cst {dimension_numbers = #tpu.dot_dimension_numbers<[1], [0], [0], [1], [0, 0, 1, 1], [], []>} : vector<16x12xbf16>, vector<12x64xbf16>, vector<16x64xf32> -> vector<16x64xf32>
    %c0_5 = arith.constant 0 : index
    %c0_6 = arith.constant 0 : index
    %4 = vector.load %arg4[%c0_5, %c0_6] : memref<16x1xf32, #tpu.memory_space<vmem>>, vector<16x1xf32>
    %5 = vector.broadcast %4 : vector<16x1xf32> to vector<16x64xf32>
    %6 = arith.addf %3, %5 : vector<16x64xf32>
    %cst_7 = arith.constant 0.000000e+00 : f32
    %7 = vector.broadcast %cst_7 : f32 to vector<16x64xf32>
    %8 = arith.maximumf %6, %7 : vector<16x64xf32>
    %c0_8 = arith.constant 0 : index
    %c0_9 = arith.constant 0 : index
    %c0_10 = arith.constant 0 : index
    %9 = vector.load %arg5[%c0_8, %c0_9, %c0_10] : memref<4x32x16xbf16, #tpu.memory_space<vmem>>, vector<1x32x16xbf16>
    %10 = vector.shape_cast %9 : vector<1x32x16xbf16> to vector<32x16xbf16>
    %11 = arith.truncf %8 : vector<16x64xf32> to vector<16x64xbf16>
    %cst_11 = arith.constant dense<0.000000e+00> : vector<32x64xf32>
    %12 = tpu.matmul %10, %11, %cst_11 {dimension_numbers = #tpu.dot_dimension_numbers<[1], [0], [0], [1], [0, 0, 1, 1], [], []>} : vector<32x16xbf16>, vector<16x64xbf16>, vector<32x64xf32> -> vector<32x64xf32>
    %c0_12 = arith.constant 0 : index
    %c0_13 = arith.constant 0 : index
    %13 = vector.load %arg3[%c0_12, %c0_13] : memref<16x12xbf16, #tpu.memory_space<vmem>>, vector<16x12xbf16>
    %c0_14 = arith.constant 0 : index
    %c1 = arith.constant 1 : index
    %c0_15 = arith.constant 0 : index
    %c0_16 = arith.constant 0 : index
    %14 = vector.load %arg2[%c0_14, %c1, %c0_15, %c0_16] : memref<1x4x12x64xbf16, #tpu.memory_space<vmem>>, vector<1x1x12x64xbf16>
    %15 = vector.shape_cast %14 : vector<1x1x12x64xbf16> to vector<12x64xbf16>
    %cst_17 = arith.constant dense<0.000000e+00> : vector<16x64xf32>
    %16 = tpu.matmul %13, %15, %cst_17 {dimension_numbers = #tpu.dot_dimension_numbers<[1], [0], [0], [1], [0, 0, 1, 1], [], []>} : vector<16x12xbf16>, vector<12x64xbf16>, vector<16x64xf32> -> vector<16x64xf32>
    %c0_18 = arith.constant 0 : index
    %c0_19 = arith.constant 0 : index
    %17 = vector.load %arg4[%c0_18, %c0_19] : memref<16x1xf32, #tpu.memory_space<vmem>>, vector<16x1xf32>
    %18 = vector.broadcast %17 : vector<16x1xf32> to vector<16x64xf32>
    %19 = arith.addf %16, %18 : vector<16x64xf32>
    %cst_20 = arith.constant 0.000000e+00 : f32
    %20 = vector.broadcast %cst_20 : f32 to vector<16x64xf32>
    %21 = arith.maximumf %19, %20 : vector<16x64xf32>
    %c1_21 = arith.constant 1 : index
    %c0_22 = arith.constant 0 : index
    %c0_23 = arith.constant 0 : index
    %22 = vector.load %arg5[%c1_21, %c0_22, %c0_23] : memref<4x32x16xbf16, #tpu.memory_space<vmem>>, vector<1x32x16xbf16>
    %23 = vector.shape_cast %22 : vector<1x32x16xbf16> to vector<32x16xbf16>
    %24 = arith.truncf %21 : vector<16x64xf32> to vector<16x64xbf16>
    %cst_24 = arith.constant dense<0.000000e+00> : vector<32x64xf32>
    %25 = tpu.matmul %23, %24, %cst_24 {dimension_numbers = #tpu.dot_dimension_numbers<[1], [0], [0], [1], [0, 0, 1, 1], [], []>} : vector<32x16xbf16>, vector<16x64xbf16>, vector<32x64xf32> -> vector<32x64xf32>
    %26 = arith.addf %12, %25 : vector<32x64xf32>
    %c0_25 = arith.constant 0 : index
    %c0_26 = arith.constant 0 : index
    %27 = vector.load %arg3[%c0_25, %c0_26] : memref<16x12xbf16, #tpu.memory_space<vmem>>, vector<16x12xbf16>
    %c0_27 = arith.constant 0 : index
    %c2 = arith.constant 2 : index
    %c0_28 = arith.constant 0 : index
    %c0_29 = arith.constant 0 : index
    %28 = vector.load %arg2[%c0_27, %c2, %c0_28, %c0_29] : memref<1x4x12x64xbf16, #tpu.memory_space<vmem>>, vector<1x1x12x64xbf16>
    %29 = vector.shape_cast %28 : vector<1x1x12x64xbf16> to vector<12x64xbf16>
    %cst_30 = arith.constant dense<0.000000e+00> : vector<16x64xf32>
    %30 = tpu.matmul %27, %29, %cst_30 {dimension_numbers = #tpu.dot_dimension_numbers<[1], [0], [0], [1], [0, 0, 1, 1], [], []>} : vector<16x12xbf16>, vector<12x64xbf16>, vector<16x64xf32> -> vector<16x64xf32>
    %c0_31 = arith.constant 0 : index
    %c0_32 = arith.constant 0 : index
    %31 = vector.load %arg4[%c0_31, %c0_32] : memref<16x1xf32, #tpu.memory_space<vmem>>, vector<16x1xf32>
    %32 = vector.broadcast %31 : vector<16x1xf32> to vector<16x64xf32>
    %33 = arith.addf %30, %32 : vector<16x64xf32>
    %cst_33 = arith.constant 0.000000e+00 : f32
    %34 = vector.broadcast %cst_33 : f32 to vector<16x64xf32>
    %35 = arith.maximumf %33, %34 : vector<16x64xf32>
    %c2_34 = arith.constant 2 : index
    %c0_35 = arith.constant 0 : index
    %c0_36 = arith.constant 0 : index
    %36 = vector.load %arg5[%c2_34, %c0_35, %c0_36] : memref<4x32x16xbf16, #tpu.memory_space<vmem>>, vector<1x32x16xbf16>
    %37 = vector.shape_cast %36 : vector<1x32x16xbf16> to vector<32x16xbf16>
    %38 = arith.truncf %35 : vector<16x64xf32> to vector<16x64xbf16>
    %cst_37 = arith.constant dense<0.000000e+00> : vector<32x64xf32>
    %39 = tpu.matmul %37, %38, %cst_37 {dimension_numbers = #tpu.dot_dimension_numbers<[1], [0], [0], [1], [0, 0, 1, 1], [], []>} : vector<32x16xbf16>, vector<16x64xbf16>, vector<32x64xf32> -> vector<32x64xf32>
    %40 = arith.addf %26, %39 : vector<32x64xf32>
    %c0_38 = arith.constant 0 : index
    %c0_39 = arith.constant 0 : index
    %41 = vector.load %arg3[%c0_38, %c0_39] : memref<16x12xbf16, #tpu.memory_space<vmem>>, vector<16x12xbf16>
    %c0_40 = arith.constant 0 : index
    %c3 = arith.constant 3 : index
    %c0_41 = arith.constant 0 : index
    %c0_42 = arith.constant 0 : index
    %42 = vector.load %arg2[%c0_40, %c3, %c0_41, %c0_42] : memref<1x4x12x64xbf16, #tpu.memory_space<vmem>>, vector<1x1x12x64xbf16>
    %43 = vector.shape_cast %42 : vector<1x1x12x64xbf16> to vector<12x64xbf16>
    %cst_43 = arith.constant dense<0.000000e+00> : vector<16x64xf32>
    %44 = tpu.matmul %41, %43, %cst_43 {dimension_numbers = #tpu.dot_dimension_numbers<[1], [0], [0], [1], [0, 0, 1, 1], [], []>} : vector<16x12xbf16>, vector<12x64xbf16>, vector<16x64xf32> -> vector<16x64xf32>
    %c0_44 = arith.constant 0 : index
    %c0_45 = arith.constant 0 : index
    %45 = vector.load %arg4[%c0_44, %c0_45] : memref<16x1xf32, #tpu.memory_space<vmem>>, vector<16x1xf32>
    %46 = vector.broadcast %45 : vector<16x1xf32> to vector<16x64xf32>
    %47 = arith.addf %44, %46 : vector<16x64xf32>
    %cst_46 = arith.constant 0.000000e+00 : f32
    %48 = vector.broadcast %cst_46 : f32 to vector<16x64xf32>
    %49 = arith.maximumf %47, %48 : vector<16x64xf32>
    %c3_47 = arith.constant 3 : index
    %c0_48 = arith.constant 0 : index
    %c0_49 = arith.constant 0 : index
    %50 = vector.load %arg5[%c3_47, %c0_48, %c0_49] : memref<4x32x16xbf16, #tpu.memory_space<vmem>>, vector<1x32x16xbf16>
    %51 = vector.shape_cast %50 : vector<1x32x16xbf16> to vector<32x16xbf16>
    %52 = arith.truncf %49 : vector<16x64xf32> to vector<16x64xbf16>
    %cst_50 = arith.constant dense<0.000000e+00> : vector<32x64xf32>
    %53 = tpu.matmul %51, %52, %cst_50 {dimension_numbers = #tpu.dot_dimension_numbers<[1], [0], [0], [1], [0, 0, 1, 1], [], []>} : vector<32x16xbf16>, vector<16x64xbf16>, vector<32x64xf32> -> vector<32x64xf32>
    %54 = arith.addf %40, %53 : vector<32x64xf32>
    %c0_51 = arith.constant 0 : index
    %c0_52 = arith.constant 0 : index
    %55 = vector.load %arg6[%c0_51, %c0_52] : memref<32x1xf32, #tpu.memory_space<vmem>>, vector<32x1xf32>
    %56 = vector.broadcast %55 : vector<32x1xf32> to vector<32x64xf32>
    %57 = arith.addf %54, %56 : vector<32x64xf32>
    %cst_53 = arith.constant 0.000000e+00 : f32
    %58 = vector.broadcast %cst_53 : f32 to vector<32x64xf32>
    %59 = arith.maximumf %57, %58 : vector<32x64xf32>
    %c0_54 = arith.constant 0 : index
    %c0_55 = arith.constant 0 : index
    %60 = vector.load %arg7[%c0_54, %c0_55] : memref<32x32xbf16, #tpu.memory_space<vmem>>, vector<32x32xbf16>
    %61 = arith.truncf %59 : vector<32x64xf32> to vector<32x64xbf16>
    %cst_56 = arith.constant dense<0.000000e+00> : vector<32x64xf32>
    %62 = tpu.matmul %60, %61, %cst_56 {dimension_numbers = #tpu.dot_dimension_numbers<[1], [0], [0], [1], [0, 0, 1, 1], [], []>} : vector<32x32xbf16>, vector<32x64xbf16>, vector<32x64xf32> -> vector<32x64xf32>
    %c0_57 = arith.constant 0 : index
    %c0_58 = arith.constant 0 : index
    %63 = vector.load %arg8[%c0_57, %c0_58] : memref<32x1xf32, #tpu.memory_space<vmem>>, vector<32x1xf32>
    %64 = vector.broadcast %63 : vector<32x1xf32> to vector<32x64xf32>
    %65 = arith.addf %62, %64 : vector<32x64xf32>
    %c0_59 = arith.constant 0 : index
    %c0_60 = arith.constant 0 : index
    %c0_61 = arith.constant 0 : index
    %66 = vector.load %arg9[%c0_59, %c0_60, %c0_61] : memref<1x32x64xf32, #tpu.memory_space<vmem>>, vector<1x32x64xf32>
    %67 = vector.shape_cast %66 : vector<1x32x64xf32> to vector<32x64xf32>
    %68 = vector.shape_cast %65 : vector<32x64xf32> to vector<1x32x64xf32>
    tpu.vector_store %arg9[%c0_59, %c0_60, %c0_61], %68 {strides = array<i32>} : memref<1x32x64xf32, #tpu.memory_space<vmem>>, vector<1x32x64xf32>,
    return
  }
  func.func @transform_0(%arg0: i32, %arg1: i32) -> (i32, i32, i32, i32) {
    %c0_i32 = arith.constant 0 : i32
    %c0_i32_0 = arith.constant 0 : i32
    %c0_i32_1 = arith.constant 0 : i32
    return %arg0, %c0_i32, %c0_i32_0, %arg1 : i32, i32, i32, i32
  }
  func.func @transform_1(%arg0: i32, %arg1: i32) -> (i32, i32) {
    %c0_i32 = arith.constant 0 : i32
    %c0_i32_0 = arith.constant 0 : i32
    %c0_i32_1 = arith.constant 0 : i32
    return %c0_i32, %c0_i32_0 : i32, i32
  }
  func.func @transform_2(%arg0: i32, %arg1: i32) -> (i32, i32) {
    %c0_i32 = arith.constant 0 : i32
    %c0_i32_0 = arith.constant 0 : i32
    %c0_i32_1 = arith.constant 0 : i32
    return %c0_i32, %c0_i32_0 : i32, i32
  }
  func.func @transform_3(%arg0: i32, %arg1: i32) -> (i32, i32, i32) {
    %c0_i32 = arith.constant 0 : i32
    %c0_i32_0 = arith.constant 0 : i32
    %c0_i32_1 = arith.constant 0 : i32
    %c0_i32_2 = arith.constant 0 : i32
    return %c0_i32, %c0_i32_0, %c0_i32_1 : i32, i32, i32
  }
  func.func @transform_4(%arg0: i32, %arg1: i32) -> (i32, i32) {
    %c0_i32 = arith.constant 0 : i32
    %c0_i32_0 = arith.constant 0 : i32
    %c0_i32_1 = arith.constant 0 : i32
    return %c0_i32, %c0_i32_0 : i32, i32
  }
  func.func @transform_5(%arg0: i32, %arg1: i32) -> (i32, i32) {
    %c0_i32 = arith.constant 0 : i32
    %c0_i32_0 = arith.constant 0 : i32
    %c0_i32_1 = arith.constant 0 : i32
    return %c0_i32, %c0_i32_0 : i32, i32
  }
  func.func @transform_6(%arg0: i32, %arg1: i32) -> (i32, i32) {
    %c0_i32 = arith.constant 0 : i32
    %c0_i32_0 = arith.constant 0 : i32
    %c0_i32_1 = arith.constant 0 : i32
    return %c0_i32, %c0_i32_0 : i32, i32
  }
  func.func @transform_7(%arg0: i32, %arg1: i32) -> (i32, i32, i32) {
    %c0_i32 = arith.constant 0 : i32
    %c0_i32_0 = arith.constant 0 : i32
    return %arg0, %c0_i32, %arg1 : i32, i32, i32
  }
}

module attributes {stable_mosaic.version = 11 : i64} {
  func.func @_stage1_neck_kernel(%arg0: i32, %arg1: i32, %arg2: memref<1x12x256xbf16, #tpu.memory_space<vmem>>, %arg3: memref<16x12xbf16, #tpu.memory_space<vmem>>, %arg4: memref<16x1xf32, #tpu.memory_space<vmem>>, %arg5: memref<32x16xbf16, #tpu.memory_space<vmem>>, %arg6: memref<32x1xf32, #tpu.memory_space<vmem>>, %arg7: memref<1x32x256xf32, #tpu.memory_space<vmem>>) attributes {dimension_semantics = [#tpu.dimension_semantics<parallel>, #tpu.dimension_semantics<parallel>], iteration_bounds = array<i64: 2, 1>, scalar_prefetch = 0 : i64, scratch_operands = 0 : i64, tpu.core_type = #tpu.core_type<tc>, window_params = [{transform_indices = @transform_0, window_bounds = array<i64: 1, 12, 256>}, {pipeline_mode = #tpu.pipeline_mode<synchronous>, transform_indices = @transform_1, window_bounds = array<i64: 16, 12>}, {pipeline_mode = #tpu.pipeline_mode<synchronous>, transform_indices = @transform_2, window_bounds = array<i64: 16, 1>}, {pipeline_mode = #tpu.pipeline_mode<synchronous>, transform_indices = @transform_3, window_bounds = array<i64: 32, 16>}, {pipeline_mode = #tpu.pipeline_mode<synchronous>, transform_indices = @transform_4, window_bounds = array<i64: 32, 1>}, {transform_indices = @transform_5, window_bounds = array<i64: 1, 32, 256>}]} {
    %c0 = arith.constant 0 : index
    %c0_0 = arith.constant 0 : index
    %0 = vector.load %arg3[%c0, %c0_0] : memref<16x12xbf16, #tpu.memory_space<vmem>>, vector<16x12xbf16>
    %c0_1 = arith.constant 0 : index
    %c0_2 = arith.constant 0 : index
    %c0_3 = arith.constant 0 : index
    %1 = vector.load %arg2[%c0_1, %c0_2, %c0_3] : memref<1x12x256xbf16, #tpu.memory_space<vmem>>, vector<1x12x256xbf16>
    %2 = vector.shape_cast %1 : vector<1x12x256xbf16> to vector<12x256xbf16>
    %cst = arith.constant dense<0.000000e+00> : vector<16x256xf32>
    %3 = tpu.matmul %0, %2, %cst {dimension_numbers = #tpu.dot_dimension_numbers<[1], [0], [0], [1], [0, 0, 1, 1], [], []>} : vector<16x12xbf16>, vector<12x256xbf16>, vector<16x256xf32> -> vector<16x256xf32>
    %c0_4 = arith.constant 0 : index
    %c0_5 = arith.constant 0 : index
    %4 = vector.load %arg4[%c0_4, %c0_5] : memref<16x1xf32, #tpu.memory_space<vmem>>, vector<16x1xf32>
    %5 = vector.broadcast %4 : vector<16x1xf32> to vector<16x256xf32>
    %6 = arith.addf %3, %5 : vector<16x256xf32>
    %cst_6 = arith.constant 0.000000e+00 : f32
    %7 = vector.broadcast %cst_6 : f32 to vector<16x256xf32>
    %8 = arith.maximumf %6, %7 : vector<16x256xf32>
    %c0_7 = arith.constant 0 : index
    %c0_8 = arith.constant 0 : index
    %9 = vector.load %arg5[%c0_7, %c0_8] : memref<32x16xbf16, #tpu.memory_space<vmem>>, vector<32x16xbf16>
    %10 = arith.truncf %8 : vector<16x256xf32> to vector<16x256xbf16>
    %cst_9 = arith.constant dense<0.000000e+00> : vector<32x256xf32>
    %11 = tpu.matmul %9, %10, %cst_9 {dimension_numbers = #tpu.dot_dimension_numbers<[1], [0], [0], [1], [0, 0, 1, 1], [], []>} : vector<32x16xbf16>, vector<16x256xbf16>, vector<32x256xf32> -> vector<32x256xf32>
    %c0_10 = arith.constant 0 : index
    %c0_11 = arith.constant 0 : index
    %12 = vector.load %arg6[%c0_10, %c0_11] : memref<32x1xf32, #tpu.memory_space<vmem>>, vector<32x1xf32>
    %13 = vector.broadcast %12 : vector<32x1xf32> to vector<32x256xf32>
    %14 = arith.addf %11, %13 : vector<32x256xf32>
    %c0_12 = arith.constant 0 : index
    %c0_13 = arith.constant 0 : index
    %c0_14 = arith.constant 0 : index
    %15 = vector.load %arg7[%c0_12, %c0_13, %c0_14] : memref<1x32x256xf32, #tpu.memory_space<vmem>>, vector<1x32x256xf32>
    %16 = vector.shape_cast %15 : vector<1x32x256xf32> to vector<32x256xf32>
    %17 = vector.shape_cast %14 : vector<32x256xf32> to vector<1x32x256xf32>
    tpu.vector_store %arg7[%c0_12, %c0_13, %c0_14], %17 {strides = array<i32>} : memref<1x32x256xf32, #tpu.memory_space<vmem>>, vector<1x32x256xf32>,
    return
  }
  func.func @transform_0(%arg0: i32, %arg1: i32) -> (i32, i32, i32) {
    %c0_i32 = arith.constant 0 : i32
    %c0_i32_0 = arith.constant 0 : i32
    return %arg0, %c0_i32, %arg1 : i32, i32, i32
  }
  func.func @transform_1(%arg0: i32, %arg1: i32) -> (i32, i32) {
    %c0_i32 = arith.constant 0 : i32
    %c0_i32_0 = arith.constant 0 : i32
    %c0_i32_1 = arith.constant 0 : i32
    return %c0_i32, %c0_i32_0 : i32, i32
  }
  func.func @transform_2(%arg0: i32, %arg1: i32) -> (i32, i32) {
    %c0_i32 = arith.constant 0 : i32
    %c0_i32_0 = arith.constant 0 : i32
    %c0_i32_1 = arith.constant 0 : i32
    return %c0_i32, %c0_i32_0 : i32, i32
  }
  func.func @transform_3(%arg0: i32, %arg1: i32) -> (i32, i32) {
    %c0_i32 = arith.constant 0 : i32
    %c0_i32_0 = arith.constant 0 : i32
    %c0_i32_1 = arith.constant 0 : i32
    return %c0_i32, %c0_i32_0 : i32, i32
  }
  func.func @transform_4(%arg0: i32, %arg1: i32) -> (i32, i32) {
    %c0_i32 = arith.constant 0 : i32
    %c0_i32_0 = arith.constant 0 : i32
    %c0_i32_1 = arith.constant 0 : i32
    return %c0_i32, %c0_i32_0 : i32, i32
  }
  func.func @transform_5(%arg0: i32, %arg1: i32) -> (i32, i32, i32) {
    %c0_i32 = arith.constant 0 : i32
    %c0_i32_0 = arith.constant 0 : i32
    return %arg0, %c0_i32, %arg1 : i32, i32, i32
  }
}

</mosaic_0001>

<bundles_post_ra>
// kernel: _encode_features.2
= control target key start
LH: loop header
LB: loop body
LE: loop exit
PB: predicated region body
PF: predicated region fallthrough
CT: control target
= control target key end

     0   :  { %s657_s18 = smov 0   ;;  %s659_s19 = smov 0   ;;  %s721_s0 = inlined_call_operand.vmem [shape: bf16[2,12,256], index: 0, kind: input, shape index: {}]   ;;  %s722_s1 = inlined_call_operand.vmem [shape: bf16[16,12], index: 1, kind: input, shape index: {}]   ;;  %s723_s2 = inlined_call_operand.vmem [shape: f32[16,1], index: 2, kind: input, shape index: {}]   ;;  %s724_s3 = inlined_call_operand.vmem [shape: bf16[32,16], index: 3, kind: input, shape index: {}]   ;;  %s725_s4 = inlined_call_operand.vmem [shape: f32[32,1], index: 4, kind: input, shape index: {}]   ;;  %s726_s5 = inlined_call_operand.vmem [shape: f32[2,32,256], index: 5, kind: output, shape index: {}]  }
   0x1   :  { %s661_s20 = smov 0  }
   0x2 LB: > { %s27_s21 = sadd.s32 1, %s620_s19  ;;  %p551_p0 = scmp.ge.s32.totalorder %s624_s20, 1  ;;  %s624_s20 = sphi %s661_s20, %s15_s20   ;;  %s620_s19 = sphi %s659_s19, %s728_s19   ;;  %s616_s18 = sphi %s657_s18, %s727_s18  }
   0x3   : > { %p29_p1 = scmp.ge.s32.totalorder %s27_s21, 2  ;;  %p208_p2 = scmp.lt.s32.totalorder %s624_s20, 3 }
   0x5   : > { %s730_s21 = smov (%p29_p1, %s27_s21), 0  ;;  %p209_p3 = pnand %p551_p0, %p208_p2 }
   0x6   : > { %p245_p4 = scmp.lt.s32.totalorder (!%p209_p3), %s616_s18, 1  ;;  %v626_v0 = vmov (!%p209_p3), 0   ;;  %v269_v1 = vld [vmem:[%s723_s2] sm:$0xff] (!%p209_p3)  ;;  %v270_v2 = vld [vmem:[%s723_s2 + $0x8] sm:$0xff] (!%p209_p3)  ;;  %vm298_vm0 = vcmask (!%p209_p3), 1045504   ;;  %v360_v5 = vld [vmem:[%s725_s4 + $0x10] sm:$0xff] (!%p209_p3) }
   0x7   : > { %212 = sbr.rel (%p209_p3) target bundleno = 473 (0x1d9), region = 40  ;;  %337 = vmatprep.mubr.bf16.mxu0 (!%p209_p3), %v626_v0  ;;  %594 = vset.pattern.permute.xlu0 (!%p209_p3), %v626_v0  ;;  %v599_v7 = vld [vmem:[%s722_s1] sm:$0xff] (!%p209_p3)   ;;  %vm294_vm1 = vcmask (!%p209_p3), 97280   ;;  %v359_v9 = vld [vmem:[%s725_s4 + $0x8] sm:$0xff] (!%p209_p3)  ;;  %v361_v10 = vld [vmem:[%s725_s4 + $0x18] sm:$0xff] (!%p209_p3)  ;;  %vm392_vm2 = vcmask (!%p209_p3), 130048  }
   0x8   : > { %273 = vperm.xlu0 (!%p209_p3), %594, %v269_v1   ;;  %431 = vmatprep.mubr.bf16.mxu1 (!%p209_p3), %v626_v0  ;;  %v358_v8 = vld [vmem:[%s725_s4] sm:$0xff] (!%p209_p3)  ;;  %v601_v28 = vld [vmem:[%s724_s3 + $0x8] sm:$0xff] (!%p209_p3)  }
   0x9   : > { %595 = vset.pattern.permute.xlu1 (!%p209_p3), %v626_v0  ;;  %v600_v27 = vld [vmem:[%s724_s3] sm:$0xff] (!%p209_p3)  }
   0xa   : > { %364 = vperm.xlu1 (!%p209_p3), %595, %v358_v8  }
   0xc   : > { %278 = vperm.xlu0 (!%p209_p3), %594, %v270_v2  }
   0xe   : > { %s732_s18 = smov (!%p245_p4, %s616_s18), 1  ;;  %369 = vperm.xlu1 %595, %v359_v9  }
   0xf   : > { %s567_s26 = sshll.u32 %s732_s18, 4  ;;  %s568_s23 = sshll.u32 %s732_s18, 6 }
  0x10   : > { %s252_s29 = scalar_lea.vmem %s721_s0, %s567_s26  ;;  %374 = vperm.xlu0 %594, %v360_v5   ;;  %s262_s26 = scalar_lea.vmem %s726_s5, %s568_s23 }
  0x11   : > { %v596_v3 = vld [vmem:[%s252_s29 + $0x4] ss:$8 sps:$4 sm:$0x3f]   ;;  %v598_v4 = vld [vmem:[%s252_s29] ss:$8 sps:$4 sm:$0x3f]  }
  0x12   : > { %559 = vmatprep.subr.msk.bf16.mxu0 %vm298_vm0, %v596_v3  ;;  %v300_v6 = vsel %vm298_vm0, %v598_v4, 0  ;;  %379 = vperm.xlu1 %595, %v361_v10  }
  0x13   : > { %306 = vmatpush1.bf16.msra.mxu0 %v300_v6 }
  0x16   : > { %560 = vmatmul.mubr.msk.bf16.vlgmr.msra.gmra.mrb[0].mxu0 %vm294_vm1, %v599_v7 }
  0x87   : > { %v274_v11 = vpop.permute.xlu0 %273 }
  0x89   : > { %v365_v29 = vpop.permute.xlu1 %364 }
  0x8b   : > { %v279_v15 = vpop.permute.xlu0 %278 }
  0x8d   : > { %v370_v33 = vpop.permute.xlu1 %369 }
  0x8f   : > { %v375_v39 = vpop.permute.xlu0 %374 }
  0x91   : > { %v380_v43 = vpop.permute.xlu1 %379 }
  0xe9   : > { %v339_v12 = vpop.f32.mrb[0].mxu0 }
  0xea   : > { %v340_v13 = vadd.f32 %v339_v12, %v274_v11  ;;  %v341_v14 = vpop.f32.mrb[1].mxu0 }
  0xeb   : > { %v342_v16 = vadd.f32 %v341_v14, %v274_v11  ;;  %v343_v17 = vpop.f32.mrb[2].mxu0 }
  0xec   : > { %v344_v18 = vadd.f32 %v343_v17, %v279_v15  ;;  %v345_v19 = vpop.f32.mrb[3].mxu0  ;;  %v348_v21 = vmax.f32 %v340_v13, 0.0 }
  0xed   : > { %v346_v20 = vadd.f32 %v345_v19, %v279_v15  ;;  %v349_v23 = vmax.f32 %v342_v16, 0.0 }
  0xee   : > { %v350_v22 = vmax.f32 %v344_v18, 0.0 }
  0xef   : > { %v351_v24 = vmax.f32 %v346_v20, 0.0 }
  0xf0   : > { %v356_v25 = vpack.c.bf16 %v350_v22, %v348_v21 }
  0xf1   : > { %v357_v26 = vpack.c.bf16 %v351_v24, %v349_v23 }
  0xf3   : > { %399 = vmatprep.subr.bf16.mxu1 %v357_v26 }
  0xf4   : > { %400 = vmatpush1.bf16.msra.mxu1 %v356_v25 }
  0xf7   : > { %563 = vmatmul.mubr.msk.bf16.vlgmr.msra.gmra.mrb[0].mxu1 %vm392_vm2, %v600_v27 }
  0xf8   : > { %441 = vmatprep.mubr.bf16.mxu1 %v626_v0 }
  0xff   : > { %564 = vmatmul.mubr.msk.bf16.gmra.mrb[4].mxu1 %vm392_vm2, %v601_v28 }
 0x1ca   : > { %v433_v30 = vpop.f32.mrb[0].mxu1 }
 0x1cb   : > { %v434_v31 = vadd.f32 %v433_v30, %v365_v29  ;;  %v435_v32 = vpop.f32.mrb[1].mxu1 }
 0x1cc   : > { %v436_v34 = vadd.f32 %v435_v32, %v365_v29  ;;  %v437_v35 = vpop.f32.mrb[2].mxu1 }
 0x1cd   : > { %452 = vst [vmem:[%s262_s26] sm:$0xff] %v434_v31  ;;  %v438_v36 = vadd.f32 %v437_v35, %v370_v33  ;;  %v439_v37 = vpop.f32.mrb[3].mxu1 }
 0x1ce   : > { %453 = vst [vmem:[%s262_s26 + $0x8] sm:$0xff] %v436_v34  ;;  %v440_v38 = vadd.f32 %v439_v37, %v370_v33 }
 0x1cf   : > { %454 = vst [vmem:[%s262_s26 + $0x10] sm:$0xff] %v438_v36 }
 0x1d0   : > { %455 = vst [vmem:[%s262_s26 + $0x18] sm:$0xff] %v440_v38 }
 0x1d2   : > { %v443_v40 = vpop.f32.mrb[4].mxu1 }
 0x1d3   : > { %v444_v41 = vadd.f32 %v443_v40, %v375_v39  ;;  %v445_v42 = vpop.f32.mrb[5].mxu1 }
 0x1d4   : > { %v446_v44 = vadd.f32 %v445_v42, %v375_v39  ;;  %v447_v45 = vpop.f32.mrb[6].mxu1 }
 0x1d5   : > { %456 = vst [vmem:[%s262_s26 + $0x20] sm:$0xff] %v444_v41  ;;  %v448_v46 = vadd.f32 %v447_v45, %v380_v43  ;;  %v449_v47 = vpop.f32.mrb[7].mxu1 }
 0x1d6   : > { %457 = vst [vmem:[%s262_s26 + $0x28] sm:$0xff] %v446_v44  ;;  %v450_v48 = vadd.f32 %v449_v47, %v380_v43 }
 0x1d7   : > { %458 = vst [vmem:[%s262_s26 + $0x30] sm:$0xff] %v448_v46 }
 0x1d8   : > { %459 = vst [vmem:[%s262_s26 + $0x38] sm:$0xff] %v450_v48 }
 0x1d9 PF: > { %s15_s20 = sadd.s32 1, %s624_s20   ;;  %s727_s18 = smov %s620_s19 }
 0x1da   : > { %p12_p5 = scmp.ge.s32.totalorder %s15_s20, 4   ;;  %s728_s19 = smov %s730_s21 }
 0x1dc   :  { %14 = sbr.rel (!%p12_p5) target bundleno = 2 (0x2), region = 70 }

// kernel: _encode_features.3
= control target key start
LH: loop header
LB: loop body
LE: loop exit
PB: predicated region body
PF: predicated region fallthrough
CT: control target
= control target key end

     0   :  { %s1321_s24 = smov 0   ;;  %s1323_s25 = smov 0   ;;  %s1446_s0 = inlined_call_operand.vmem [shape: bf16[2,4,12,64], index: 0, kind: input, shape index: {}]   ;;  %s1447_s1 = inlined_call_operand.vmem [shape: bf16[16,12], index: 1, kind: input, shape index: {}]   ;;  %s1448_s2 = inlined_call_operand.vmem [shape: f32[16,1], index: 2, kind: input, shape index: {}]   ;;  %s1449_s3 = inlined_call_operand.vmem [shape: bf16[4,32,16], index: 3, kind: input, shape index: {}]   ;;  %s1450_s4 = inlined_call_operand.vmem [shape: f32[32,1], index: 4, kind: input, shape index: {}]   ;;  %s1451_s5 = inlined_call_operand.vmem [shape: bf16[32,32], index: 5, kind: input, shape index: {}]   ;;  %s1452_s6 = inlined_call_operand.vmem [shape: f32[32,1], index: 6, kind: input, shape index: {}]   ;;  %s1453_s7 = inlined_call_operand.vmem [shape: f32[2,32,64], index: 7, kind: output, shape index: {}]  }
   0x1   :  { %s1325_s26 = smov 0  }
   0x2 LB: > { %s29_s27 = sadd.s32 1, %s1272_s25  ;;  %p1062_p0 = scmp.ge.s32.totalorder %s1276_s26, 1  ;;  %s1276_s26 = sphi %s1325_s26, %s17_s26   ;;  %s1272_s25 = sphi %s1323_s25, %s1455_s25   ;;  %s1268_s24 = sphi %s1321_s24, %s1454_s24  }
   0x3   : > { %p31_p1 = scmp.ge.s32.totalorder %s29_s27, 2  ;;  %p256_p2 = scmp.lt.s32.totalorder %s1276_s26, 3 }
   0x5   : > { %s1457_s27 = smov (%p31_p1, %s29_s27), 0  ;;  %p257_p3 = pnand %p1062_p0, %p256_p2 }
   0x6   : > { %p294_p4 = scmp.lt.s32.totalorder (!%p257_p3), %s1268_s24, 1  ;;  %v1278_v0 = vmov (!%p257_p3), 0.0   ;;  %v315_v1 = vld [vmem:[%s1448_s2] sm:$0xff] (!%p257_p3)  ;;  %vm1279_vm0 = vmmov (!%p257_p3), 0   ;;  %vm341_vm1 = vcmask (!%p257_p3), 1045504   ;;  %v1280_v2 = vmov (!%p257_p3), 0  }
   0x7   : > { %260 = sbr.rel (%p257_p3) target bundleno = 729 (0x2d9), region = 48  ;;  %1142 = vmatprep.subr.bf16.mxu0 (!%p257_p3), %v1278_v0  ;;  %1148 = vmatprep.subr.bf16.mxu1 (!%p257_p3), %v1278_v0  ;;  %v316_v3 = vld [vmem:[%s1448_s2 + $0x8] sm:$0xff] (!%p257_p3)  ;;  %v1241_v5 = vld [vmem:[%s1447_s1] sm:$0xff] (!%p257_p3)   ;;  %vm337_vm2 = vcmask (!%p257_p3), 97280   ;;  %v844_v10 = vld [vmem:[%s1450_s4 + $0x10] sm:$0xff] (!%p257_p3)  ;;  %vm463_vm3 = vcmask (!%p257_p3), 130048  }
   0x8   : > { %1144 = vmatprep.mubr.msk.bf16.mxu0 (!%p257_p3), %vm1279_vm0, %v1278_v0  ;;  %1150 = vmatprep.mubr.msk.bf16.mxu1 (!%p257_p3), %vm1279_vm0, %v1278_v0  ;;  %v880_v12 = vld [vmem:[%s1452_s6] sm:$0xff] (!%p257_p3)  ;;  %v882_v14 = vld [vmem:[%s1452_s6 + $0x10] sm:$0xff] (!%p257_p3)  ;;  %v843_v18 = vld [vmem:[%s1450_s4 + $0x8] sm:$0xff] (!%p257_p3)  ;;  %vm914_vm4 = vcmask (!%p257_p3), 261120   ;;  %vm970_vm5 = vcmask (!%p257_p3), 523264  }
   0x9   : > { %1237 = vset.pattern.permute.xlu0 (!%p257_p3), %v1280_v2  ;;  %1238 = vset.pattern.permute.xlu1 (!%p257_p3), %v1280_v2  ;;  %v1244_v16 = vld [vmem:[%s1449_s3 + $0x10] sm:$0xff] (!%p257_p3)   ;;  %v842_v17 = vld [vmem:[%s1450_s4] sm:$0xff] (!%p257_p3)  ;;  %v845_v19 = vld [vmem:[%s1450_s4 + $0x18] sm:$0xff] (!%p257_p3) }
   0xa   : > { %319 = vperm.xlu0 (!%p257_p3), %1237, %v315_v1   ;;  %848 = vperm.xlu1 (!%p257_p3), %1238, %v842_v17   ;;  %v881_v20 = vld [vmem:[%s1452_s6 + $0x8] sm:$0xff] (!%p257_p3)  ;;  %v883_v21 = vld [vmem:[%s1452_s6 + $0x18] sm:$0xff] (!%p257_p3)  ;;  %v1246_v47 = vld [vmem:[%s1449_s3] sm:$0xff] (!%p257_p3)  }
   0xb   : > { %v1245_v45 = vld [vmem:[%s1449_s3 + $0x18] sm:$0xff] (!%p257_p3)   ;;  %v1247_v61 = vld [vmem:[%s1449_s3 + $0x8] sm:$0xff] (!%p257_p3)   ;;  %v1248_v62 = vld [vmem:[%s1449_s3 + $0x20] sm:$0xff] (!%p257_p3)  }
   0xc   : > { %v1250_v1 = vld [vmem:[%s1449_s3 + $0x30] sm:$0xff] (!%p257_p3)   ;;  %v1251_v2 = vld [vmem:[%s1449_s3 + $0x38] sm:$0xff] (!%p257_p3)  }
   0xe   : > { %s1459_s24 = smov (!%p294_p4, %s1268_s24), 1  ;;  %324 = vperm.xlu0 %1237, %v316_v3   ;;  %853 = vperm.xlu1 %1238, %v843_v18   ;;  %v1252_v3 = vld [vmem:[%s1451_s5] sm:$0xff]  }
   0xf   : > { %s1116_s30 = sshll.u32 %s1459_s24, 5 }
  0x10   : > { %s301_s12 = scalar_lea.vmem %s1446_s0, %s1116_s30  ;;  %s309_s17 = scalar_lea.vmem %s1453_s7, %s1116_s30 }
  0x11   : > { %v1239_v4 = vld [vmem:[%s301_s12] sm:$0x3f]   ;;  %v1240_v6 = vld [vmem:[%s301_s12 + $0x8] sm:$0x3f]   ;;  %v1242_v9 = vld [vmem:[%s301_s12 + $0x10] sm:$0x3f]  }
  0x12   : > { %v343_v7 = vsel %vm341_vm1, %v1239_v4, 0  ;;  %v402_v8 = vsel %vm341_vm1, %v1240_v6, 0  ;;  %v593_v11 = vsel %vm341_vm1, %v1242_v9, 0  ;;  %858 = vperm.xlu0 %1237, %v844_v10   ;;  %v1243_v13 = vld [vmem:[%s301_s12 + $0x18] sm:$0x3f]   ;;  %863 = vperm.xlu1 %1238, %v845_v19  }
  0x13   : > { %1143 = vmatpush3.bf16.msra.mxu0 %v343_v7  ;;  %1149 = vmatpush3.bf16.msra.mxu1 %v402_v8  ;;  %v722_v15 = vsel %vm341_vm1, %v1243_v13, 0 }
  0x14   : > { %1166 = vmatprep.subr.bf16.mxu1 %v1278_v0 }
  0x16   : > { %1145 = vmatmul.mubr.msk.bf16.vlgmr.msra.gmra.mrb[0].mxu0 %vm337_vm2, %v1241_v5  ;;  %1151 = vmatmul.mubr.msk.bf16.vlgmr.msra.gmra.mrb[0].mxu1 %vm337_vm2, %v1241_v5 }
  0x17   : > { %1167 = vmatpush3.bf16.msra.mxu1 %v593_v11  ;;  %1168 = vmatprep.mubr.msk.bf16.mxu1 %vm1279_vm0, %v1278_v0 }
  0x18   : > { %1178 = vmatprep.subr.bf16.mxu1 %v1278_v0  ;;  %886 = vperm.xlu0 %1237, %v880_v12  }
  0x19   : > { %1156 = vmatprep.mubr.msk.bf16.mxu0 %vm463_vm3, %v1244_v16  ;;  %891 = vperm.xlu1 %1238, %v881_v20  }
  0x1c   : > { %896 = vperm.xlu0 %1237, %v882_v14  }
  0x1d   : > { %901 = vperm.xlu1 %1238, %v883_v21  }
  0x1e   : > { %1169 = vmatmul.mubr.msk.bf16.vlgmr.msra.gmra.mrb[4].mxu1 %vm337_vm2, %v1241_v5 }
  0x1f   : > { %1179 = vmatpush3.bf16.msra.mxu1 %v722_v15  ;;  %1180 = vmatprep.mubr.msk.bf16.mxu1 %vm1279_vm0, %v1278_v0  ;;  %v1249_v0 = vld [vmem:[%s1449_s3 + $0x28] sm:$0xff]  }
  0x26   : > { %1181 = vmatmul.mubr.msk.bf16.vlgmr.msra.gmra.mrb[8].mxu1 %vm337_vm2, %v1241_v5 }
  0x27   : > { %1194 = vmatprep.mubr.msk.bf16.mxu1 %vm914_vm4, %v1252_v3 }
  0x89   : > { %v320_v22 = vpop.permute.xlu0 %319  ;;  %v849_v4 = vpop.permute.xlu1 %848 }
  0x8d   : > { %v325_v23 = vpop.permute.xlu0 %324  ;;  %v854_v5 = vpop.permute.xlu1 %853 }
  0x91   : > { %v859_v6 = vpop.permute.xlu0 %858  ;;  %v864_v10 = vpop.permute.xlu1 %863 }
  0xe9   : > { %v379_v24 = vpop.f32.mrb[0].mxu0  ;;  %v438_v26 = vpop.f32.mrb[0].mxu1 }
  0xea   : > { %v380_v25 = vadd.f32 %v379_v24, %v320_v22  ;;  %v1146_v27 = vpop.f32.mrb[1].mxu0  ;;  %v439_v28 = vadd.f32 %v438_v26, %v320_v22  ;;  %v1152_v29 = vpop.f32.mrb[1].mxu1 }
  0xeb   : > { %v382_v30 = vpop.f32.mrb[2].mxu0  ;;  %v441_v32 = vpop.f32.mrb[2].mxu1 }
  0xec   : > { %v383_v31 = vadd.f32 %v382_v30, %v325_v23  ;;  %v1147_v33 = vpop.f32.mrb[3].mxu0  ;;  %v442_v34 = vadd.f32 %v441_v32, %v325_v23  ;;  %v1153_v35 = vpop.f32.mrb[3].mxu1  ;;  %v386_v36 = vmax.f32 %v380_v25, 0.0  ;;  %v445_v38 = vmax.f32 %v439_v28, 0.0 }
  0xed   : > { %v892_v24 = vpop.permute.xlu1 %891 }
  0xee   : > { %v387_v37 = vmax.f32 %v383_v31, 0.0  ;;  %v446_v39 = vmax.f32 %v442_v34, 0.0 }
  0xf0   : > { %v392_v40 = vpack.c.bf16 %v387_v37, %v386_v36  ;;  %v452_v41 = vpack.c.bf16 %v446_v39, %v445_v38 }
  0xf1   : > { %v629_v42 = vpop.f32.mrb[4].mxu1  ;;  %v902_v29 = vpop.permute.xlu1 %901 }
  0xf2   : > { %v630_v43 = vadd.f32 %v629_v42, %v320_v22  ;;  %1154 = vmatprep.subr.bf16.mxu0 %v452_v41  ;;  %v1170_v44 = vpop.f32.mrb[5].mxu1 }
  0xf3   : > { %1155 = vmatpush3.bf16.msra.mxu0 %v452_v41  ;;  %v632_v46 = vpop.f32.mrb[6].mxu1 }
  0xf4   : > { %v633_v48 = vadd.f32 %v632_v46, %v325_v23  ;;  %1160 = vmatprep.subr.bf16.mxu0 %v392_v40  ;;  %v1171_v49 = vpop.f32.mrb[7].mxu1  ;;  %v636_v50 = vmax.f32 %v630_v43, 0.0 }
  0xf6   : > { %v637_v51 = vmax.f32 %v633_v48, 0.0  ;;  %1157 = vmatmul.mubr.msk.bf16.vlgmr.msra.gmra.mrb[4].mxu0 %vm463_vm3, %v1245_v45 }
  0xf7   : > { %1161 = vmatpush3.bf16.msra.mxu0 %v392_v40  ;;  %1162 = vmatprep.mubr.msk.bf16.mxu0 %vm463_vm3, %v1246_v47 }
  0xf8   : > { %v643_v52 = vpack.c.bf16 %v637_v51, %v636_v50 }
  0xf9   : > { %v758_v53 = vpop.f32.mrb[8].mxu1 }
  0xfa   : > { %v759_v54 = vadd.f32 %v758_v53, %v320_v22  ;;  %1172 = vmatprep.subr.bf16.mxu0 %v643_v52  ;;  %v1182_v55 = vpop.f32.mrb[9].mxu1  ;;  %v1253_v22 = vld [vmem:[%s1451_s5 + $0x8] sm:$0xff]  }
  0xfb   : > { %v761_v56 = vpop.f32.mrb[10].mxu1 }
  0xfc   : > { %v762_v57 = vadd.f32 %v761_v56, %v325_v23  ;;  %v1183_v58 = vpop.f32.mrb[11].mxu1  ;;  %v765_v59 = vmax.f32 %v759_v54, 0.0  ;;  %v887_v23 = vpop.permute.xlu0 %886 }
  0xfe   : > { %v766_v60 = vmax.f32 %v762_v57, 0.0 }
 0x100   : > { %v772_v63 = vpack.c.bf16 %v766_v60, %v765_v59  ;;  %v897_v25 = vpop.permute.xlu0 %896 }
 0x102   : > { %1163 = vmatmul.mubr.msk.bf16.vlgmr.msra.gmra.mrb[4].mxu0 %vm463_vm3, %v1247_v61 }
 0x103   : > { %1173 = vmatpush3.bf16.msra.mxu0 %v643_v52  ;;  %1174 = vmatprep.mubr.msk.bf16.mxu0 %vm463_vm3, %v1248_v62 }
 0x104   : > { %1184 = vmatprep.subr.bf16.mxu0 %v772_v63 }
 0x10e   : > { %1175 = vmatmul.mubr.msk.bf16.vlgmr.msra.gmra.mrb[4].mxu0 %vm463_vm3, %v1249_v0 }
 0x10f   : > { %1185 = vmatpush3.bf16.msra.mxu0 %v772_v63  ;;  %1186 = vmatprep.mubr.msk.bf16.mxu0 %vm463_vm3, %v1250_v1 }
 0x11a   : > { %1187 = vmatmul.mubr.msk.bf16.vlgmr.msra.gmra.mrb[4].mxu0 %vm463_vm3, %v1251_v2 }
 0x1ed   : > { %v1188_v7 = vpop.f32.mrb[4].mxu0 }
 0x1ee   : > { %v868_v8 = vadd.f32 %v1188_v7, %v859_v6  ;;  %v823_v9 = vpop.f32.mrb[5].mxu0 }
 0x1ef   : > { %v866_v11 = vadd.f32 %v849_v4, %v823_v9  ;;  %v1189_v12 = vpop.f32.mrb[6].mxu0 }
 0x1f0   : > { %v869_v13 = vadd.f32 %v1189_v12, %v864_v10  ;;  %v826_v14 = vpop.f32.mrb[7].mxu0  ;;  %v872_v16 = vmax.f32 %v868_v8, 0.0 }
 0x1f1   : > { %v867_v15 = vadd.f32 %v854_v5, %v826_v14  ;;  %v870_v18 = vmax.f32 %v866_v11, 0.0 }
 0x1f2   : > { %v873_v17 = vmax.f32 %v869_v13, 0.0 }
 0x1f3   : > { %v871_v19 = vmax.f32 %v867_v15, 0.0 }
 0x1f4   : > { %v879_v20 = vpack.c.bf16 %v873_v17, %v872_v16 }
 0x1f5   : > { %v878_v21 = vpack.c.bf16 %v871_v19, %v870_v18 }
 0x1f7   : > { %1190 = vmatprep.subr.bf16.mxu1 %v878_v21 }
 0x1f8   : > { %1191 = vmatpush3.bf16.msra.mxu1 %v878_v21 }
 0x1f9   : > { %1192 = vmatprep.subr.bf16.mxu1 %v879_v20 }
 0x1fc   : > { %1193 = vmatpush3.bf16.msra.mxu1 %v879_v20 }
 0x1ff   : > { %1195 = vmatmul.mubr.msk.bf16.vlgmr.msra.gmra.mrb[12].mxu1 %vm914_vm4, %v1253_v22 }
 0x2d2   : > { %v1196_v26 = vpop.f32.mrb[12].mxu1 }
 0x2d3   : > { %v964_v27 = vadd.f32 %v1196_v26, %v897_v25  ;;  %v955_v28 = vpop.f32.mrb[13].mxu1 }
 0x2d4   : > { %v956_v30 = vadd.f32 %v955_v28, %v887_v23  ;;  %v1197_v31 = vpop.f32.mrb[14].mxu1 }
 0x2d5   : > { %973 = vst.msk [vmem:[%s309_s17 + $0x10] sm:$0xff] %vm970_vm5, %v964_v27  ;;  %v967_v32 = vadd.f32 %v1197_v31, %v902_v29  ;;  %v958_v33 = vpop.f32.mrb[15].mxu1 }
 0x2d6   : > { %971 = vst.msk [vmem:[%s309_s17] sm:$0xff] %vm970_vm5, %v956_v30  ;;  %v959_v34 = vadd.f32 %v958_v33, %v892_v24 }
 0x2d7   : > { %974 = vst.msk [vmem:[%s309_s17 + $0x18] sm:$0xff] %vm970_vm5, %v967_v32 }
 0x2d8   : > { %972 = vst.msk [vmem:[%s309_s17 + $0x8] sm:$0xff] %vm970_vm5, %v959_v34 }
 0x2d9 PF: > { %s17_s26 = sadd.s32 1, %s1276_s26   ;;  %s1454_s24 = smov %s1272_s25 }
 0x2da   : > { %p14_p5 = scmp.ge.s32.totalorder %s17_s26, 4   ;;  %s1455_s25 = smov %s1457_s27 }
 0x2dc   :  { %16 = sbr.rel (!%p14_p5) target bundleno = 2 (0x2), region = 84 }

</bundles_post_ra>
